<compile_context>
chip_gen: v6e
topology: v6e:2x2x1
jax: 0.10.0
libtpu: 0.0.40
codegen_flags: <defaults>
</compile_context>

<pallas_src>
import jax
import jax.numpy as jnp
from jax.experimental import pallas as pl
from jax.experimental.pallas import tpu as pltpu


def _bias_mean_kernel(bias_ref, x_ref, o_ref):
    # bias_ref: SMEM scalar-prefetch ref, shape (1,)
    # x_ref:    VMEM block, shape (TB, C, HW)  -- HW on lanes, C on sublanes
    # o_ref:    VMEM block, shape (TB, HW)
    x = x_ref[...].astype(jnp.float32)
    inv_c = 1.0 / x_ref.shape[1]
    mean_c = jnp.sum(x, axis=1) * inv_c            # (TB, HW) sublane reduction
    bias = bias_ref[0]
    # Float x*0 is not folded by XLA/Mosaic, so NaN/Inf in x propagates exactly
    # like the PyTorch module.
    o_ref[...] = (bias + 0.0 * mean_c).astype(o_ref.dtype)


def _bias_fill_kernel(bias_ref, o_ref):
    # Fast path: result is a constant fill; x is never read.
    o_ref[...] = jnp.full(o_ref.shape, bias_ref[0], o_ref.dtype)


def _batch_tile(B, bytes_per_batch_elem, max_tile_bytes=4 * 1024 * 1024):
    """Pick a batch tile: whole batch if small, else a multiple of 8 rows that
    keeps the tile a few MiB (stays well under v7x's 64 MiB VMEM when
    double-buffered)."""
    if B * bytes_per_batch_elem <= max_tile_bytes:
        return B
    tb = max(8, (max_tile_bytes // max(bytes_per_batch_elem, 1)) // 8 * 8)
    return min(tb, B)


def bias_module_forward(x, bias, *, propagate_nonfinite=True):
    """x: (B, C, H, W); bias: scalar. Returns bias + 0 * mean(x, axis=1), shape (B, H, W)."""
    B, C, H, W = x.shape
    HW = H * W
    out_dtype = jnp.promote_types(x.dtype, jnp.float32)
    bias_arr = jnp.asarray(bias, out_dtype).reshape((1,))

    itemsize = jnp.dtype(x.dtype).itemsize

    if propagate_nonfinite:
        # Stream x (preserves NaN/Inf semantics of 0 * mean(x)).
        tb = _batch_tile(B, C * HW * itemsize)
        grid_b = pl.cdiv(B, tb)
        x2 = x.reshape(B, C, HW)                   # lane-dense layout
        out = pl.pallas_call(
            _bias_mean_kernel,
            out_shape=jax.ShapeDtypeStruct((B, HW), out_dtype),
            grid_spec=pltpu.PrefetchScalarGridSpec(
                num_scalar_prefetch=1,
                grid=(grid_b,),
                in_specs=[
                    pl.BlockSpec((tb, C, HW), lambda b, bias_ref: (b, 0, 0)),
                ],
                out_specs=pl.BlockSpec((tb, HW), lambda b, bias_ref: (b, 0)),
            ),
            compiler_params=pltpu.CompilerParams(
                dimension_semantics=("parallel",),
            ),
        )(bias_arr, x2)
    else:
        # Constant fill: no x read at all (identical result for finite inputs).
        tb = _batch_tile(B, HW * jnp.dtype(out_dtype).itemsize)
        grid_b = pl.cdiv(B, tb)
        out = pl.pallas_call(
            _bias_fill_kernel,
            out_shape=jax.ShapeDtypeStruct((B, HW), out_dtype),
            grid_spec=pltpu.PrefetchScalarGridSpec(
                num_scalar_prefetch=1,
                grid=(grid_b,),
                in_specs=[],
                out_specs=pl.BlockSpec((tb, HW), lambda b, bias_ref: (b, 0)),
            ),
            compiler_params=pltpu.CompilerParams(
                dimension_semantics=("parallel",),
            ),
        )(bias_arr)

    return out.reshape(B, H, W)


if __name__ == "__main__":
    key = jax.random.PRNGKey(0)
    B, C, H, W = 2, 4, 16, 16
    x = jax.random.normal(key, (B, C, H, W), dtype=jnp.float32)

    # Deterministic parameter init, matching nn.Parameter(torch.tensor(0.5))
    bias = jnp.float32(0.5)

    # Default path: streams x, preserves exact NaN/Inf propagation.
    out = bias_module_forward(x, bias)
    out = jax.block_until_ready(out)

    # Fast path: constant fill (no x read).
    out_fast = bias_module_forward(x, bias, propagate_nonfinite=False)
    out_fast = jax.block_until_ready(out_fast)

    # Reference check (plain JAX)
    ref = bias + 0.0 * jnp.mean(x, axis=1)
    assert out.shape == (B, H, W)
    assert out_fast.shape == (B, H, W)
    assert jnp.allclose(out, ref, atol=1e-6), "mismatch vs reference (mean path)"
    assert jnp.allclose(out_fast, ref, atol=1e-6), "mismatch vs reference (fill path)"

    print("KERNEL_OK")
</pallas_src>

<mosaic_0001>
module attributes {stable_mosaic.version = 11 : i64} {
  func.func @_bias_mean_kernel(%arg0: i32, %arg1: memref<1xf32, #tpu.memory_space<smem>>, %arg2: memref<2x4x256xf32, #tpu.memory_space<vmem>>, %arg3: memref<2x256xf32, #tpu.memory_space<vmem>>) attributes {dimension_semantics = [#tpu.dimension_semantics<parallel>], iteration_bounds = array<i64: 1>, scalar_prefetch = 1 : i64, scratch_operands = 0 : i64, tpu.core_type = #tpu.core_type<tc>, window_params = [{transform_indices = @transform_0, window_bounds = array<i64: 2, 4, 256>}, {transform_indices = @transform_1, window_bounds = array<i64: 2, 256>}]} {
    %c0 = arith.constant 0 : index
    %c0_0 = arith.constant 0 : index
    %c0_1 = arith.constant 0 : index
    %0 = vector.load %arg2[%c0, %c0_0, %c0_1] : memref<2x4x256xf32, #tpu.memory_space<vmem>>, vector<2x4x256xf32>
    %cst = arith.constant dense<0.000000e+00> : vector<2x256xf32>
    %1 = vector.multi_reduction <add>, %0, %cst [1] : vector<2x4x256xf32> to vector<2x256xf32>
    %cst_2 = arith.constant 2.500000e-01 : f32
    %2 = vector.broadcast %cst_2 : f32 to vector<2x256xf32>
    %3 = arith.mulf %1, %2 : vector<2x256xf32>
    %c0_3 = arith.constant 0 : index
    %4 = memref.load %arg1[%c0_3] : memref<1xf32, #tpu.memory_space<smem>>
    %cst_4 = arith.constant 0.000000e+00 : f32
    %5 = vector.broadcast %cst_4 : f32 to vector<2x256xf32>
    %6 = arith.mulf %5, %3 : vector<2x256xf32>
    %7 = vector.broadcast %4 : f32 to vector<2x256xf32>
    %8 = arith.addf %7, %6 : vector<2x256xf32>
    %c0_5 = arith.constant 0 : index
    %c0_6 = arith.constant 0 : index
    %9 = vector.load %arg3[%c0_5, %c0_6] : memref<2x256xf32, #tpu.memory_space<vmem>>, vector<2x256xf32>
    tpu.vector_store %arg3[%c0_5, %c0_6], %8 {strides = array<i32>} : memref<2x256xf32, #tpu.memory_space<vmem>>, vector<2x256xf32>,
    return
  }
  func.func @transform_0(%arg0: i32, %arg1: memref<1xf32, #tpu.memory_space<smem>>) -> (i32, i32, i32) {
    %c0_i32 = arith.constant 0 : i32
    %c0_i32_0 = arith.constant 0 : i32
    %c0_i32_1 = arith.constant 0 : i32
    return %arg0, %c0_i32, %c0_i32_0 : i32, i32, i32
  }
  func.func @transform_1(%arg0: i32, %arg1: memref<1xf32, #tpu.memory_space<smem>>) -> (i32, i32) {
    %c0_i32 = arith.constant 0 : i32
    %c0_i32_0 = arith.constant 0 : i32
    return %arg0, %c0_i32 : i32, i32
  }
}

</mosaic_0001>

<bundles_post_ra>
// kernel: tpu_custom_call.1
= control target key start
LH: loop header
LB: loop body
LE: loop exit
PB: predicated region body
PF: predicated region fallthrough
CT: control target
= control target key end

     0   :  { %8 = vsyncpa [#allocation5], 0  ;;  %s206_s0 = inlined_call_operand.<no memory space> [shape: f32[1], index: 0, kind: input, shape index: {}]   ;;  %s207_s1 = inlined_call_operand.hbm [shape: f32[2,4,256], index: 1, kind: input, shape index: {}]   ;;  %s208_s2 = inlined_call_operand.hbm [shape: f32[2,256], index: 2, kind: output, shape index: {}]  }
   0x1   :  { %9 = vsyncpa [#allocation6], 0  ;;  %s177_s9 = smov [#allocation4]  }
   0x2   :  { %s15_s10 = sshll.u32 %s177_s9, 4  ;;  %s16_s10 = int_to_ptr.vmem [resolvable:$true] %s15_s10 }
   0x3   :  { %s141_s11 = scalar_lea.vmem %s16_s10, 256  ;;  %p146_p1 = scmp.lt.s32.totalorder %s16_s10, %s16_s10 }
   0x4   :  { %p142_p0 = scmp.ne.s32.totalorder %s16_s10, %s141_s11  ;;  %p147_p2 = scmp.lt.s32.totalorder %s141_s11, %s141_s11 }
   0x6   :  { %p148_p3 = por %p147_p2, %p146_p1 }
   0x8   :  { %p149_p4 = pnand %p148_p3, %p142_p0 }
   0xa   :  { %152 = shalt.err (!%p149_p4)
}
   0xb   :  { %s178_s12 = smov 128   ;;  %s179_s13 = smov 8  }
   0xc   :  { %21 = dma.hbm_to_vmem [thread:$0]  %s207_s1, 256, %s16_s10, [#allocation5], %s178_s12, %s178_s12, %s179_s13  }
   0xd   :  { %173 = dma.done.wait [#allocation5], 256  }
   0xe   :  { %174 = vsyncadd [#allocation5], 4294967040  ;;  %vm33_vm0 = vcmask 1043456   ;;  %v25_v0 = vld [vmem:[#allocation4] sm:$0xff]  ;;  %v26_v1 = vld [vmem:[#allocation4 + $0x8] sm:$0xff]  ;;  %v84_v28 = vlaneseq  ;;  %v71_v37 = vstv %s206_s0  ;;  %vm101_vm1 = vcmask 1041409  }
   0xf   :  { %v29_v2 = vcombine.high %v25_v0, %v25_v0  ;;  %v30_v3 = vcombine.high %v26_v1, %v26_v1  ;;  %v34_v4 = vsel %vm33_vm0, %v25_v0, 0.0  ;;  %v48_v5 = vsel %vm33_vm0, %v26_v1, 0.0  ;;  %s181_s0 = smov [#allocation7]  }
  0x10   :  { %v35_v6 = vrot.slane %v34_v4, 4  ;;  %v49_v7 = vrot.slane %v48_v5, 4  ;;  %v180_v26 = vmov 1983009808   ;;  %v85_v39 = vshrl.u32 %v84_v28, 7  ;;  %s117_s17 = sshll.u32 %s181_s0, 4  ;;  %s118_s17 = int_to_ptr.vmem [resolvable:$true] %s117_s17 }
  0x11   :  { %v41_v8 = vsel %vm33_vm0, %v29_v2, 0.0  ;;  %v55_v9 = vsel %vm33_vm0, %v30_v3, 0.0  ;;  %v82_v27 = vunpack.c.l.s4 %v180_v26  ;;  %vm103_vm2 = vcmask 1043459   ;;  %s153_s18 = scalar_lea.vmem %s118_s17, 64  ;;  %p158_p6 = scmp.lt.s32.totalorder %s118_s17, %s118_s17 }
  0x12   :  { %v36_v10 = vadd.f32 %v35_v6, %v34_v4  ;;  %v42_v11 = vrot.slane %v41_v8, 4  ;;  %v50_v12 = vadd.f32 %v49_v7, %v48_v5  ;;  %v56_v13 = vrot.slane %v55_v9, 4  ;;  %p154_p5 = scmp.ne.s32.totalorder %s118_s17, %s153_s18  ;;  %p159_p7 = scmp.lt.s32.totalorder %s153_s18, %s153_s18 }
  0x13   :  { %v83_v38 = vunpack.c.0.s8 %v82_v27  ;;  %vm105_vm3 = vcmask 1045509   ;;  %vm107_vm4 = vcmask 1047559  }
  0x14   :  { %v37_v14 = vrot.slane %v36_v10, 2  ;;  %v43_v15 = vadd.f32 %v42_v11, %v41_v8  ;;  %v51_v16 = vrot.slane %v50_v12, 2  ;;  %v57_v17 = vadd.f32 %v56_v13, %v55_v9  ;;  %p160_p8 = por %p159_p7, %p158_p6 }
  0x15   :  { %v86_v50 = vsub.s32 %v83_v38, %v85_v39 }
  0x16   :  { %v38_v18 = vadd.f32 %v37_v14, %v36_v10  ;;  %v44_v19 = vrot.slane %v43_v15, 2  ;;  %v52_v20 = vadd.f32 %v51_v16, %v50_v12  ;;  %v58_v21 = vrot.slane %v57_v17, 2  ;;  %p161_p9 = pnand %p160_p8, %p154_p5 }
  0x18   :  { %v39_v22 = vrot.slane %v38_v18, 1  ;;  %v45_v23 = vadd.f32 %v44_v19, %v43_v15  ;;  %v53_v24 = vrot.slane %v52_v20, 1  ;;  %v59_v25 = vadd.f32 %v58_v21, %v57_v17 }
  0x1a   :  { %v40_v29 = vadd.f32 %v39_v22, %v38_v18  ;;  %v46_v30 = vrot.slane %v45_v23, 1  ;;  %v54_v31 = vadd.f32 %v53_v24, %v52_v20  ;;  %v60_v32 = vrot.slane %v59_v25, 1 }
  0x1c   :  { %v47_v33 = vadd.f32 %v46_v30, %v45_v23  ;;  %v61_v34 = vadd.f32 %v60_v32, %v59_v25  ;;  %v62_v35 = vmul.f32 0.25, %v40_v29  ;;  %v64_v36 = vmul.f32 0.25, %v54_v31 }
  0x1e   :  { %v63_v40 = vmul.f32 0.25, %v47_v33  ;;  %v65_v41 = vmul.f32 0.25, %v61_v34  ;;  %v67_v42 = vmul.f32 0.0, %v62_v35  ;;  %v69_v43 = vmul.f32 0.0, %v64_v36 }
  0x20   :  { %v68_v44 = vmul.f32 0.0, %v63_v40  ;;  %v70_v45 = vmul.f32 0.0, %v65_v41  ;;  %v72_v46 = vadd.f32 %v71_v37, %v67_v42  ;;  %v74_v47 = vadd.f32 %v71_v37, %v69_v43 }
  0x22   :  { %v73_v48 = vadd.f32 %v71_v37, %v68_v44  ;;  %v75_v49 = vadd.f32 %v71_v37, %v70_v45 }
  0x24   :  { %v80_v51 = vcombine.low %v72_v46, %v73_v48  ;;  %v88_v52 = vcombine.low %v74_v47, %v75_v49 }
  0x26   :  { %v87_v53 = vrot.slane %v80_v51, %v86_v50  ;;  %v95_v54 = vrot.slane %v88_v52, %v86_v50 }
  0x28   :  { %v100_v55 = vrot.slane %v95_v54, 7 }
  0x2a   :  { %v102_v56 = vsel %vm101_vm1, %v100_v55, %v87_v53 }
  0x2b   :  { %v104_v57 = vsel %vm103_vm2, %v100_v55, %v102_v56 }
  0x2c   :  { %v106_v58 = vsel %vm105_vm3, %v100_v55, %v104_v57 }
  0x2d   :  { %v108_v59 = vsel %vm107_vm4, %v100_v55, %v106_v58 }
  0x2e   :  { %110 = vst [vmem:[#allocation7] sm:$0xf] %v108_v59 }
  0x2f   :  { %164 = shalt.err (!%p161_p9)
}
  0x30   :  { %120 = dma.vmem_to_hbm [thread:$0]  %s118_s17, 64, %s208_s2, [#allocation6]  }
  0x31   :  { %175 = dma.done.wait [#allocation6], 64  }
  0x32   :  { %176 = vsyncadd [#allocation6], 4294967232 }
  0x33   :  { %124 = vsyncpa [#allocation5], 1 }
  0x34   :  { %125 = vsyncpa [#allocation6], 1 }

</bundles_post_ra>
